<compile_context>
chip_gen: v6e
topology: v6e:2x2x1
jax: 0.10.0
libtpu: 0.0.40
codegen_flags: <defaults>
</compile_context>

<pallas_src>
import jax
import jax.numpy as jnp
from jax.experimental import pallas as pl
from jax.experimental.pallas import tpu as pltpu


def _round_up(v, m):
    return ((v + m - 1) // m) * m


def feedforward_kernel(x_ref, w1t_ref, b1_ref, w2_ref, b2_ref, o_ref):
    # fc1 on the MXU: (TM, D) @ (D, H) -> (TM, H), f32 accumulate.
    h = jnp.dot(x_ref[...], w1t_ref[...], preferred_element_type=jnp.float32)
    # Bias + ReLU: the single fused VPU pass over the (TM, H) intermediate.
    h = jnp.maximum(h + b1_ref[...], 0.0)
    # fc2 on the MXU (lots of slack there): (TM, H) @ (H, 1) -> (TM, 1).
    # Avoids extra VPU multiply / XLU reduce passes over (TM, H).
    y = jnp.dot(h, w2_ref[...], preferred_element_type=jnp.float32)
    y = y + b2_ref[0, 0]                                   # scalar fc2 bias from SMEM
    # Sigmoid on the EUP; (TM, 1) store (output is only B floats total).
    o_ref[...] = jax.nn.sigmoid(y).astype(o_ref.dtype)


def feedforward(x, w1, b1, w2, b2, *, tm=None):
    """x: (B, D) f32.  Torch-layout params: w1 (H, D), b1 (H,), w2 (1, H), b2 (1,).

    Returns (B, 1) f32, matching torch Feedforward.forward (all-f32 math).
    """
    B, D = x.shape
    H = w1.shape[0]

    if tm is None:
        # Payload-aware batch tile: aim for a few MiB of x per grid step so the
        # DMA stream approaches the HBM roofline, while keeping the
        # double-buffered x tiles + the (TM, H) f32 ReLU intermediate small.
        bytes_per_row = 4 * (2 * D + H)                 # dbl-buffered x row + fc1 row
        tm = ((8 << 20) // max(bytes_per_row, 1)) // 128 * 128
        tm = int(min(max(tm, 128), 2048))
        tm = min(tm, _round_up(B, 8))                   # don't exceed the batch
    grid = (pl.cdiv(B, tm),)                            # partial tail block: no padded copy

    # One-time, tiny param prep in torch layout -> kernel layout (all f32).
    w1t = jnp.asarray(w1, jnp.float32).T                # (D, H)
    b1c = jnp.reshape(b1, (1, H)).astype(jnp.float32)   # (1, H)
    w2c = jnp.reshape(w2, (H, 1)).astype(jnp.float32)   # (H, 1)
    b2s = jnp.reshape(b2, (1, 1)).astype(jnp.float32)   # (1, 1) -> SMEM scalar

    # Explicit VMEM budget: dbl-buffered x/out tiles + resident params + intermediate.
    # TODO(synk): for very large H*D, add a D-reduction grid axis / H-chunking so the
    # resident weight never exceeds the v7x 64 MiB budget.
    vmem_bytes = 4 * (2 * tm * D + 2 * tm + 2 * tm * H + 2 * (D * H + 2 * H)) + (2 << 20)
    vmem_limit = int(min(max(vmem_bytes, 16 << 20), 48 << 20))

    cost = pl.CostEstimate(
        flops=2 * B * D * H + 2 * B * H,
        transcendentals=B,                               # one sigmoid (exp) per row
        bytes_accessed=4 * (B * D + D * H + 2 * H + 1 + B),
    )

    out = pl.pallas_call(
        feedforward_kernel,
        out_shape=jax.ShapeDtypeStruct((B, 1), jnp.float32),
        grid_spec=pltpu.PrefetchScalarGridSpec(
            num_scalar_prefetch=0,
            grid=grid,
            in_specs=[
                pl.BlockSpec((tm, D), lambda i: (i, 0)),   # x tile (pipelined stream)
                pl.BlockSpec((D, H), lambda i: (0, 0)),    # w1^T resident
                pl.BlockSpec((1, H), lambda i: (0, 0)),    # b1 resident
                pl.BlockSpec((H, 1), lambda i: (0, 0)),    # w2 resident
                pl.BlockSpec(memory_space=pltpu.MemorySpace.SMEM),  # b2 scalar
            ],
            out_specs=pl.BlockSpec((tm, 1), lambda i: (i, 0)),
        ),
        compiler_params=pltpu.CompilerParams(
            dimension_semantics=("parallel",),             # megacore sharding on v7x
            vmem_limit_bytes=vmem_limit,
        ),
        cost_estimate=cost,
    )(x.astype(jnp.float32), w1t, b1c, w2c, b2s)

    return out


def init_params(key, input_size, hidden_size):
    """Deterministic init mimicking torch.nn.Linear (uniform +/- 1/sqrt(fan_in)),
    stored in torch layout: w1 (H, D), b1 (H,), w2 (1, H), b2 (1,)."""
    k1, k2, k3, k4 = jax.random.split(key, 4)
    bound1 = 1.0 / (input_size ** 0.5)
    bound2 = 1.0 / (hidden_size ** 0.5)
    w1 = jax.random.uniform(k1, (hidden_size, input_size), jnp.float32, -bound1, bound1)
    b1 = jax.random.uniform(k2, (hidden_size,), jnp.float32, -bound1, bound1)
    w2 = jax.random.uniform(k3, (1, hidden_size), jnp.float32, -bound2, bound2)
    b2 = jax.random.uniform(k4, (1,), jnp.float32, -bound2, bound2)
    return w1, b1, w2, b2


if __name__ == "__main__":
    input_size = 16
    hidden_size = 32
    batch = 8

    key = jax.random.PRNGKey(0)
    kx, kp = jax.random.split(key)
    x = jax.random.normal(kx, (batch, input_size), jnp.float32)
    w1, b1, w2, b2 = init_params(kp, input_size, hidden_size)

    out = feedforward(x, w1, b1, w2, b2)
    out = jax.block_until_ready(out)

    # Pure-JAX f32 reference (same math as the PyTorch forward, torch layout).
    hidden = jnp.maximum(x @ w1.T + b1[None, :], 0.0)
    ref = jax.nn.sigmoid(hidden @ w2.T + b2[None, :])

    assert out.shape == (batch, 1)
    # All-f32 kernel math; tolerance only covers MXU accumulation-order effects.
    assert jnp.allclose(out, ref, atol=2e-3, rtol=2e-3)

    print("KERNEL_OK")
</pallas_src>

<mosaic_0001>
module attributes {stable_mosaic.version = 11 : i64} {
  func.func @feedforward_kernel(%arg0: i32, %arg1: memref<8x16xf32, #tpu.memory_space<vmem>>, %arg2: memref<16x32xf32, #tpu.memory_space<vmem>>, %arg3: memref<1x32xf32, #tpu.memory_space<vmem>>, %arg4: memref<32x1xf32, #tpu.memory_space<vmem>>, %arg5: memref<1x1xf32, #tpu.memory_space<smem>>, %arg6: memref<8x1xf32, #tpu.memory_space<vmem>>) attributes {dimension_semantics = [#tpu.dimension_semantics<parallel>], iteration_bounds = array<i64: 1>, scalar_prefetch = 0 : i64, scratch_operands = 0 : i64, tpu.core_type = #tpu.core_type<tc>, window_params = [{transform_indices = @transform_0, window_bounds = array<i64: 8, 16>}, {pipeline_mode = #tpu.pipeline_mode<synchronous>, transform_indices = @transform_1, window_bounds = array<i64: 16, 32>}, {pipeline_mode = #tpu.pipeline_mode<synchronous>, transform_indices = @transform_2, window_bounds = array<i64: 1, 32>}, {pipeline_mode = #tpu.pipeline_mode<synchronous>, transform_indices = @transform_3, window_bounds = array<i64: 32, 1>}, {transform_indices = @transform_4, window_bounds = array<i64: 1, 1>}, {transform_indices = @transform_5, window_bounds = array<i64: 8, 1>}]} {
    %c0 = arith.constant 0 : index
    %c0_0 = arith.constant 0 : index
    %0 = vector.load %arg1[%c0, %c0_0] : memref<8x16xf32, #tpu.memory_space<vmem>>, vector<8x16xf32>
    %c0_1 = arith.constant 0 : index
    %c0_2 = arith.constant 0 : index
    %1 = vector.load %arg2[%c0_1, %c0_2] : memref<16x32xf32, #tpu.memory_space<vmem>>, vector<16x32xf32>
    %cst = arith.constant dense<0.000000e+00> : vector<8x32xf32>
    %2 = tpu.matmul %0, %1, %cst {dimension_numbers = #tpu.dot_dimension_numbers<[1], [0], [0], [1], [0, 0, 1, 1], [], []>} : vector<8x16xf32>, vector<16x32xf32>, vector<8x32xf32> -> vector<8x32xf32>
    %c0_3 = arith.constant 0 : index
    %c0_4 = arith.constant 0 : index
    %3 = vector.load %arg3[%c0_3, %c0_4] : memref<1x32xf32, #tpu.memory_space<vmem>>, vector<1x32xf32>
    %4 = vector.broadcast %3 : vector<1x32xf32> to vector<8x32xf32>
    %5 = arith.addf %2, %4 : vector<8x32xf32>
    %cst_5 = arith.constant 0.000000e+00 : f32
    %6 = vector.broadcast %cst_5 : f32 to vector<8x32xf32>
    %7 = arith.maximumf %5, %6 : vector<8x32xf32>
    %c0_6 = arith.constant 0 : index
    %c0_7 = arith.constant 0 : index
    %8 = vector.load %arg4[%c0_6, %c0_7] : memref<32x1xf32, #tpu.memory_space<vmem>>, vector<32x1xf32>
    %cst_8 = arith.constant dense<0.000000e+00> : vector<8x1xf32>
    %9 = tpu.matmul %7, %8, %cst_8 {dimension_numbers = #tpu.dot_dimension_numbers<[1], [0], [0], [1], [0, 0, 1, 1], [], []>} : vector<8x32xf32>, vector<32x1xf32>, vector<8x1xf32> -> vector<8x1xf32>
    %c0_9 = arith.constant 0 : index
    %c0_10 = arith.constant 0 : index
    %10 = memref.load %arg5[%c0_9, %c0_10] : memref<1x1xf32, #tpu.memory_space<smem>>
    %11 = vector.broadcast %10 : f32 to vector<8x1xf32>
    %12 = arith.addf %9, %11 : vector<8x1xf32>
    %13 = arith.negf %12 : vector<8x1xf32>
    %14 = math.exp %13 : vector<8x1xf32>
    %cst_11 = arith.constant 1.000000e+00 : f32
    %15 = vector.broadcast %cst_11 : f32 to vector<8x1xf32>
    %16 = arith.addf %15, %14 : vector<8x1xf32>
    %17 = arith.divf %15, %16 : vector<8x1xf32>
    %c0_12 = arith.constant 0 : index
    %c0_13 = arith.constant 0 : index
    %18 = vector.load %arg6[%c0_12, %c0_13] : memref<8x1xf32, #tpu.memory_space<vmem>>, vector<8x1xf32>
    tpu.vector_store %arg6[%c0_12, %c0_13], %17 {strides = array<i32>} : memref<8x1xf32, #tpu.memory_space<vmem>>, vector<8x1xf32>,
    return
  }
  func.func @transform_0(%arg0: i32) -> (i32, i32) {
    %c0_i32 = arith.constant 0 : i32
    %c0_i32_0 = arith.constant 0 : i32
    return %arg0, %c0_i32 : i32, i32
  }
  func.func @transform_1(%arg0: i32) -> (i32, i32) {
    %c0_i32 = arith.constant 0 : i32
    %c0_i32_0 = arith.constant 0 : i32
    %c0_i32_1 = arith.constant 0 : i32
    return %c0_i32, %c0_i32_0 : i32, i32
  }
  func.func @transform_2(%arg0: i32) -> (i32, i32) {
    %c0_i32 = arith.constant 0 : i32
    %c0_i32_0 = arith.constant 0 : i32
    %c0_i32_1 = arith.constant 0 : i32
    return %c0_i32, %c0_i32_0 : i32, i32
  }
  func.func @transform_3(%arg0: i32) -> (i32, i32) {
    %c0_i32 = arith.constant 0 : i32
    %c0_i32_0 = arith.constant 0 : i32
    %c0_i32_1 = arith.constant 0 : i32
    return %c0_i32, %c0_i32_0 : i32, i32
  }
  func.func @transform_4(%arg0: i32) -> (i32, i32) {
    %c0_i32 = arith.constant 0 : i32
    %c0_i32_0 = arith.constant 0 : i32
    %c0_i32_1 = arith.constant 0 : i32
    return %c0_i32, %c0_i32_0 : i32, i32
  }
  func.func @transform_5(%arg0: i32) -> (i32, i32) {
    %c0_i32 = arith.constant 0 : i32
    %c0_i32_0 = arith.constant 0 : i32
    return %arg0, %c0_i32 : i32, i32
  }
}

</mosaic_0001>

<bundles_post_ra>
// kernel: tpu_custom_call.1
= control target key start
LH: loop header
LB: loop body
LE: loop exit
PB: predicated region body
PF: predicated region fallthrough
CT: control target
= control target key end

     0   :  { %v234_v0 = vmov 0.0   ;;  %vm235_vm0 = vmmov 0   ;;  %vm31_vm1 = vcmask 130048   ;;  %vm112_vm2 = vcmask 261120   ;;  %s296_s1 = inlined_call_operand.vmem [shape: f32[16,32], index: 1, kind: input, shape index: {}]   ;;  %s297_s0 = inlined_call_operand.vmem [shape: f32[8,16], index: 0, kind: input, shape index: {}]   ;;  %s298_s3 = inlined_call_operand.vmem [shape: f32[32,1], index: 3, kind: input, shape index: {}]   ;;  %s299_s2 = inlined_call_operand.vmem [shape: f32[1,32], index: 2, kind: input, shape index: {}]   ;;  %s300_s4 = inlined_call_operand.<no memory space> [shape: f32[1,1], index: 4, kind: input, shape index: {}]   ;;  %s301_s5 = inlined_call_operand.vmem [shape: f32[8,1], index: 5, kind: output, shape index: {}]  }
   0x1   :  { %210 = vmatprep.subr.mxu0 %v234_v0  ;;  %v23_v1 = vld [vmem:[%s296_s1 + $0x8] sm:$0xff]  ;;  %v22_v2 = vld [vmem:[%s296_s1] sm:$0xff]  ;;  %214 = vmatprep.mubr.msk.f32.mxu0 %vm235_vm0, %v234_v0  ;;  %v109_v4 = vld [vmem:[%s298_s3 + $0x18] sm:$0xff]  ;;  %v111_v13 = vstv %s300_s4  ;;  %vm192_vm3 = vcmask 7168  }
   0x2   :  { %211 = vmatpush3.msra.mxu0 %v23_v1  ;;  %v21_v3 = vld [vmem:[%s297_s0] sm:$0xff]  ;;  %217 = vmatprep.subr.mxu1 %v234_v0  ;;  %v108_v5 = vld [vmem:[%s298_s3 + $0x10] sm:$0xff]  ;;  %v107_v6 = vld [vmem:[%s298_s3 + $0x8] sm:$0xff] }
   0x3   :  { %212 = vmatprep.subr.mxu0 %v234_v0  ;;  %218 = vmatpush3.msra.mxu1 %v109_v4  ;;  %v106_v7 = vld [vmem:[%s298_s3] sm:$0xff] }
   0x4   :  { %213 = vmatpush3.msra.mxu0 %v22_v2  ;;  %219 = vmatprep.subr.mxu1 %v234_v0  ;;  %v198_v8 = vld [vmem:[%s299_s2] ss:$0 sm:$0xff] }
   0x5   :  { %215 = vmatmul.mubr.msk.f32.vlgmr.msra.gmra.mxu0 %vm31_vm1, %v21_v3  ;;  %225 = vmatprep.mubr.msk.f32.mxu1 %vm235_vm0, %v234_v0 }
   0x6   :  { %220 = vmatpush3.msra.mxu1 %v108_v5 }
   0x7   :  { %221 = vmatprep.subr.mxu1 %v234_v0 }
   0x8   :  { %222 = vmatpush3.msra.mxu1 %v107_v6 }
   0x9   :  { %223 = vmatprep.subr.mxu1 %v234_v0 }
   0xa   :  { %224 = vmatpush3.msra.mxu1 %v106_v7 }
  0xc5   :  { %v101_v9 = vpop.f32.mrf.mxu0 }
  0xc6   :  { %v102_v10 = vadd.f32 %v198_v8, %v101_v9 }
  0xc7   :  { %v216_v11 = vpop.f32.mrf.mxu0 }
  0xc8   :  { %v105_v12 = vmax.f32 %v102_v10, 0.0 }
  0xca   :  { %226 = vmatmul.mubr.msk.f32.vlgmr.msra.gmra.mxu1 %vm112_vm2, %v105_v12 }
 0x18a   :  { %v182_v14 = vpop.f32.mrf.mxu1 }
 0x18b   :  { %v183_v15 = vadd.f32 %v182_v14, %v111_v13 }
 0x18c   :  { %v227_v16 = vpop.f32.mrf.mxu1 }
 0x18d   :  { %v201_v17 = vmul.f32 -1.442695, %v183_v15 }
 0x18f   :  { %230 = vpow2.f32 %v201_v17 }
 0x19c   :  { %v231_v18 = vpop.eup %230 }
 0x19d   :  { %v189_v19 = vadd.f32 1.0, %v231_v18 }
 0x19f   :  { %232 = vrcp.f32 %v189_v19 }
 0x1ac   :  { %v233_v20 = vpop.eup %232 }
 0x1ad   :  { %193 = vst.msk [vmem:[%s301_s5] sm:$0xff] %vm192_vm3, %v233_v20 }

</bundles_post_ra>
